<compile_context>
chip_gen: v7x
topology: tpu7x:2x2x1
jax: 0.10.0
libtpu: 0.0.40
codegen_flags: <defaults>
</compile_context>

<pallas_src>
import numpy as np
import jax
import jax.numpy as jnp
from jax.experimental import pallas as pl
from jax.experimental.pallas import tpu as pltpu

MAX_BLOCK_ROWS = 512  # 512 rows x (<=512 lanes) x 4 B  <= 1 MiB per buffer


def _make_dropout_kernel(p: float):
    inv_keep = np.float32(1.0 / (1.0 - p))
    # keep iff bits >= thresh  ->  P(keep) = (2^32 - thresh) / 2^32 = 1 - p
    thresh = np.uint32(min(int(round(p * float(2 ** 32))), 2 ** 32 - 1))

    def kernel(bits_ref, xr_ref, xi_ref, or_ref, oi_ref):
        keep = bits_ref[...] >= thresh
        zero = jnp.float32(0.0)
        # Same real mask multiplies both real and imaginary parts.
        or_ref[...] = jnp.where(keep, xr_ref[...] * inv_keep, zero)
        oi_ref[...] = jnp.where(keep, xi_ref[...] * inv_keep, zero)

    return kernel


def _choose_width(n: int):
    """Widest lane-dense last dim that divides n; otherwise pad to 128."""
    for w in (512, 256, 128):
        if n % w == 0:
            return w, 0
    return 128, (-n) % 128


def complex_dropout(x_real, x_imag, *, p: float, key, training: bool = True):
    """Pallas implementation of ComplexDropout.forward.

    x_real, x_imag: float32 arrays of identical shape (e.g. NCHW).
    Returns (out_real, out_imag) with the same shapes.
    """
    assert x_real.shape == x_imag.shape
    assert x_real.dtype == jnp.float32 and x_imag.dtype == jnp.float32
    assert 0.0 <= p < 1.0, "dropout probability must be in [0, 1)"

    if (not training) or p == 0.0:
        # Dropout of ones in eval mode (or p=0) is identity.
        return x_real, x_imag

    shape = x_real.shape
    n = int(np.prod(shape))

    width, pad = _choose_width(n)
    rows = (n + pad) // width

    if pad:
        xr = jnp.pad(x_real.reshape(-1), (0, pad)).reshape(rows, width)
        xi = jnp.pad(x_imag.reshape(-1), (0, pad)).reshape(rows, width)
    else:
        # Contiguous reshape: no extra HBM pass.
        xr = x_real.reshape(rows, width)
        xi = x_imag.reshape(rows, width)

    # Portable random bits (one u32 per element), thresholded inside the kernel.
    bits = jax.random.bits(key, (rows, width), dtype=jnp.uint32)

    # Tile the row axis; last (partial) block is masked by Pallas.
    block_rows = rows if rows <= MAX_BLOCK_ROWS else MAX_BLOCK_ROWS
    grid = (pl.cdiv(rows, block_rows),)

    spec = pl.BlockSpec((block_rows, width), lambda i: (i, 0))
    kernel = _make_dropout_kernel(p)

    out_r, out_i = pl.pallas_call(
        kernel,
        out_shape=(
            jax.ShapeDtypeStruct((rows, width), jnp.float32),
            jax.ShapeDtypeStruct((rows, width), jnp.float32),
        ),
        grid=grid,
        in_specs=[spec, spec, spec],
        out_specs=(spec, spec),
        compiler_params=pltpu.CompilerParams(
            dimension_semantics=("parallel",),
        ),
        cost_estimate=pl.CostEstimate(
            flops=4 * rows * width,
            transcendentals=0,
            bytes_accessed=5 * rows * width * 4,  # 3 reads + 2 writes
        ),
    )(bits, xr, xi)

    if pad:
        out_r = out_r.reshape(-1)[:n].reshape(shape)
        out_i = out_i.reshape(-1)[:n].reshape(shape)
    else:
        out_r = out_r.reshape(shape)
        out_i = out_i.reshape(shape)
    return out_r, out_i


if __name__ == "__main__":
    key = jax.random.PRNGKey(0)
    kr, ki, kd = jax.random.split(key, 3)

    # NCHW input, as the PyTorch module would receive: batch=2, channels=4, 16x16
    B, C, H, W = 2, 4, 16, 16
    x_real = jax.random.normal(kr, (B, C, H, W), dtype=jnp.float32)
    x_imag = jax.random.normal(ki, (B, C, H, W), dtype=jnp.float32)

    p = 0.3
    out_r, out_i = complex_dropout(x_real, x_imag, p=p, key=kd, training=True)
    out_r = jax.block_until_ready(out_r)
    out_i = jax.block_until_ready(out_i)

    # Sanity checks on dropout semantics:
    # - elements are either 0 or input/(1-p)
    # - the same mask is applied to real and imaginary parts
    xr_np, xi_np = np.asarray(x_real), np.asarray(x_imag)
    or_np, oi_np = np.asarray(out_r), np.asarray(out_i)
    scale = 1.0 / (1.0 - p)

    mask_r = np.where(xr_np != 0.0, or_np / xr_np, scale)
    mask_i = np.where(xi_np != 0.0, oi_np / xi_np, scale)
    ok_vals = np.all(
        np.isclose(mask_r, 0.0, atol=1e-5) | np.isclose(mask_r, scale, rtol=1e-4)
    )
    ok_shared = np.allclose(mask_r, mask_i, rtol=1e-4, atol=1e-5)

    # Rough keep-rate check (loose bound for a 2048-element sample).
    keep_rate = np.mean(mask_r > 0.5 * scale)
    ok_rate = abs(keep_rate - (1.0 - p)) < 0.1

    # Eval-mode path (identity)
    er, ei = complex_dropout(x_real, x_imag, p=p, key=kd, training=False)
    ok_eval = np.allclose(np.asarray(er), xr_np) and np.allclose(np.asarray(ei), xi_np)

    assert out_r.shape == (B, C, H, W) and out_i.shape == (B, C, H, W)
    assert ok_vals and ok_shared and ok_rate and ok_eval

    print("KERNEL_OK")
</pallas_src>

<mosaic_0001>
module attributes {stable_mosaic.version = 11 : i64} {
  func.func @kernel(%arg0: i32, %arg1: memref<4x512xi32, #tpu.memory_space<vmem>>, %arg2: memref<4x512xf32, #tpu.memory_space<vmem>>, %arg3: memref<4x512xf32, #tpu.memory_space<vmem>>, %arg4: memref<4x512xf32, #tpu.memory_space<vmem>>, %arg5: memref<4x512xf32, #tpu.memory_space<vmem>>) attributes {dimension_semantics = [#tpu.dimension_semantics<parallel>], iteration_bounds = array<i64: 1>, scalar_prefetch = 0 : i64, scratch_operands = 0 : i64, tpu.core_type = #tpu.core_type<tc>, window_params = [{transform_indices = @transform_0, window_bounds = array<i64: 4, 512>}, {transform_indices = @transform_1, window_bounds = array<i64: 4, 512>}, {transform_indices = @transform_2, window_bounds = array<i64: 4, 512>}, {transform_indices = @transform_3, window_bounds = array<i64: 4, 512>}, {transform_indices = @transform_4, window_bounds = array<i64: 4, 512>}]} {
    %c0 = arith.constant 0 : index
    %c0_0 = arith.constant 0 : index
    %0 = vector.load %arg1[%c0, %c0_0] : memref<4x512xi32, #tpu.memory_space<vmem>>, vector<4x512xi32>
    %c1288490189_i32 = arith.constant 1288490189 : i32
    %1 = vector.broadcast %c1288490189_i32 : i32 to vector<4x512xi32>
    %2 = arith.cmpi uge, %0, %1 : vector<4x512xi32>
    %c0_1 = arith.constant 0 : index
    %c0_2 = arith.constant 0 : index
    %3 = vector.load %arg2[%c0_1, %c0_2] : memref<4x512xf32, #tpu.memory_space<vmem>>, vector<4x512xf32>
    %cst = arith.constant 1.42857146 : f32
    %4 = vector.broadcast %cst : f32 to vector<4x512xf32>
    %5 = arith.mulf %3, %4 : vector<4x512xf32>
    %cst_3 = arith.constant 0.000000e+00 : f32
    %6 = vector.broadcast %cst_3 : f32 to vector<4x512xf32>
    %7 = arith.select %2, %5, %6 : vector<4x512xi1>, vector<4x512xf32>
    %c0_4 = arith.constant 0 : index
    %c0_5 = arith.constant 0 : index
    %8 = vector.load %arg4[%c0_4, %c0_5] : memref<4x512xf32, #tpu.memory_space<vmem>>, vector<4x512xf32>
    tpu.vector_store %arg4[%c0_4, %c0_5], %7 {strides = array<i32>} : memref<4x512xf32, #tpu.memory_space<vmem>>, vector<4x512xf32>,
    %c0_6 = arith.constant 0 : index
    %c0_7 = arith.constant 0 : index
    %9 = vector.load %arg3[%c0_6, %c0_7] : memref<4x512xf32, #tpu.memory_space<vmem>>, vector<4x512xf32>
    %cst_8 = arith.constant 1.42857146 : f32
    %10 = vector.broadcast %cst_8 : f32 to vector<4x512xf32>
    %11 = arith.mulf %9, %10 : vector<4x512xf32>
    %cst_9 = arith.constant 0.000000e+00 : f32
    %12 = vector.broadcast %cst_9 : f32 to vector<4x512xf32>
    %13 = arith.select %2, %11, %12 : vector<4x512xi1>, vector<4x512xf32>
    %c0_10 = arith.constant 0 : index
    %c0_11 = arith.constant 0 : index
    %14 = vector.load %arg5[%c0_10, %c0_11] : memref<4x512xf32, #tpu.memory_space<vmem>>, vector<4x512xf32>
    tpu.vector_store %arg5[%c0_10, %c0_11], %13 {strides = array<i32>} : memref<4x512xf32, #tpu.memory_space<vmem>>, vector<4x512xf32>,
    return
  }
  func.func @transform_0(%arg0: i32) -> (i32, i32) {
    %c0_i32 = arith.constant 0 : i32
    %c0_i32_0 = arith.constant 0 : i32
    return %arg0, %c0_i32 : i32, i32
  }
  func.func @transform_1(%arg0: i32) -> (i32, i32) {
    %c0_i32 = arith.constant 0 : i32
    %c0_i32_0 = arith.constant 0 : i32
    return %arg0, %c0_i32 : i32, i32
  }
  func.func @transform_2(%arg0: i32) -> (i32, i32) {
    %c0_i32 = arith.constant 0 : i32
    %c0_i32_0 = arith.constant 0 : i32
    return %arg0, %c0_i32 : i32, i32
  }
  func.func @transform_3(%arg0: i32) -> (i32, i32) {
    %c0_i32 = arith.constant 0 : i32
    %c0_i32_0 = arith.constant 0 : i32
    return %arg0, %c0_i32 : i32, i32
  }
  func.func @transform_4(%arg0: i32) -> (i32, i32) {
    %c0_i32 = arith.constant 0 : i32
    %c0_i32_0 = arith.constant 0 : i32
    return %arg0, %c0_i32 : i32, i32
  }
}

</mosaic_0001>

<bundles_post_ra>
// kernel: tpu_custom_call.1
= control target key start
LH: loop header
LB: loop body
LE: loop exit
PB: predicated region body
PF: predicated region fallthrough
CT: control target
= control target key end

     0   :  { %10 = vsyncpa [#allocation3], 0  ;;  %s327_s0 = inlined_call_operand.hbm [shape: u32[4,512], index: 0, kind: input, shape index: {}]   ;;  %s328_s1 = inlined_call_operand.hbm [shape: f32[4,512], index: 1, kind: input, shape index: {}]   ;;  %s329_s2 = inlined_call_operand.hbm [shape: f32[4,512], index: 2, kind: input, shape index: {}]   ;;  %s330_s3 = inlined_call_operand.hbm [shape: f32[4,512], index: 3, kind: output, shape index: {0}]   ;;  %s331_s4 = inlined_call_operand.hbm [shape: f32[4,512], index: 4, kind: output, shape index: {1}]  }
   0x1   :  { %11 = vsyncpa [#allocation6], 0 }
   0x2   :  { %12 = vsyncpa [#allocation4], 0 }
   0x3   :  { %13 = vsyncpa [#allocation10], 0  ;;  %s226_s15 = smov [#allocation5]   ;;  %s227_s17 = smov [#allocation2]  }
   0x4   :  { %s30_s16 = sshll.u32 %s226_s15, 4  ;;  %s20_s18 = sshll.u32 %s227_s17, 4  ;;  %s31_s16 = int_to_ptr.vmem [resolvable:$true] %s30_s16  ;;  %s21_s18 = int_to_ptr.vmem [resolvable:$true] %s20_s18 }
   0x5   :  { %s108_s21 = scalar_lea.hbm %s328_s1, 256 }
   0x6   :  { %p109_p0 = scmp.ne.s32.totalorder %s328_s1, %s108_s21  ;;  %p112_p1 = scmp.lt.u32.totalorder %s108_s21, %s328_s1 }
   0x8   :  { %p114_p2 = pnand %p112_p1, %p109_p0 }
   0xa   :  { %117 = shalt.err (!%p114_p2)
}
   0xb   :  { %s118_s26 = scalar_lea.vmem %s31_s16, 256  ;;  %p123_p4 = scmp.lt.s32.totalorder %s31_s16, %s31_s16 }
   0xc   :  { %p119_p3 = scmp.ne.s32.totalorder %s31_s16, %s118_s26  ;;  %p124_p5 = scmp.lt.s32.totalorder %s118_s26, %s118_s26 }
   0xe   :  { %p125_p6 = por %p124_p5, %p123_p4 }
  0x10   :  { %p126_p7 = pnand %p125_p6, %p119_p3 }
  0x12   :  { %129 = shalt.err (!%p126_p7)
}
  0x13   :  { %33 = dma.hbm_to_vmem [thread:$0]  %s328_s1, 256, %s31_s16, [#allocation6]  }
  0x14   :  { %s130_s5 = scalar_lea.hbm %s327_s0, 256 }
  0x15   :  { %p131_p8 = scmp.ne.s32.totalorder %s327_s0, %s130_s5  ;;  %p134_p9 = scmp.lt.u32.totalorder %s130_s5, %s327_s0 }
  0x17   :  { %p136_p10 = pnand %p134_p9, %p131_p8 }
  0x19   :  { %139 = shalt.err (!%p136_p10)
}
  0x1a   :  { %s140_s10 = scalar_lea.vmem %s21_s18, 256  ;;  %p145_p12 = scmp.lt.s32.totalorder %s21_s18, %s21_s18 }
  0x1b   :  { %p141_p11 = scmp.ne.s32.totalorder %s21_s18, %s140_s10  ;;  %p146_p13 = scmp.lt.s32.totalorder %s140_s10, %s140_s10 }
  0x1d   :  { %p147_p0 = por %p146_p13, %p145_p12 }
  0x1f   :  { %p148_p1 = pnand %p147_p0, %p141_p11 }
  0x21   :  { %151 = shalt.err (!%p148_p1)
}
  0x22   :  { %23 = dma.hbm_to_vmem [thread:$0]  %s327_s0, 256, %s21_s18, [#allocation3]  }
  0x23   :  { %s228_s12 = smov [#allocation7]   ;;  %s152_s16 = scalar_lea.hbm %s329_s2, 256 }
  0x24   :  { %s40_s13 = sshll.u32 %s228_s12, 4  ;;  %p153_p2 = scmp.ne.s32.totalorder %s329_s2, %s152_s16  ;;  %s41_s13 = int_to_ptr.vmem [resolvable:$true] %s40_s13 }
  0x25   :  { %p156_p3 = scmp.lt.u32.totalorder %s152_s16, %s329_s2 }
  0x27   :  { %p158_p4 = pnand %p156_p3, %p153_p2 }
  0x29   :  { %161 = shalt.err (!%p158_p4)
}
  0x2a   :  { %s162_s22 = scalar_lea.vmem %s41_s13, 256  ;;  %p167_p6 = scmp.lt.s32.totalorder %s41_s13, %s41_s13 }
  0x2b   :  { %p163_p5 = scmp.ne.s32.totalorder %s41_s13, %s162_s22  ;;  %p168_p7 = scmp.lt.s32.totalorder %s162_s22, %s162_s22 }
  0x2d   :  { %p169_p8 = por %p168_p7, %p167_p6 }
  0x2f   :  { %p170_p9 = pnand %p169_p8, %p163_p5 }
  0x31   :  { %173 = shalt.err (!%p170_p9)
}
  0x32   :  { %43 = dma.hbm_to_vmem [thread:$0]  %s329_s2, 256, %s41_s13, [#allocation6]  }
  0x33   :  { %218 = dma.done.wait [#allocation3], 256  }
  0x34   :  { %219 = vsyncadd [#allocation3], 4294967040 }
  0x35   :  { %220 = dma.done.wait [#allocation6], 512  }
  0x36   :  { %221 = vsyncadd [#allocation6], 4294966784  ;;  %v53_v0 = vld [vmem:[#allocation2] sm:$0xff]  ;;  %v57_v1 = vld [vmem:[#allocation5] sm:$0xff]  ;;  %s229_s23 = smov [#allocation8]   ;;  %s230_s25 = smov [#allocation9]  }
  0x37   :  { %v54_v2 = vld [vmem:[#allocation2 + $0x8] sm:$0xff]  ;;  %vm55_vm0 = vcmp.ge.u32.totalorder %v53_v0, 1288490189  ;;  %v59_v3 = vmul.f32 1.4285715, %v57_v1  ;;  %s79_s24 = sshll.u32 %s229_s23, 4  ;;  %s80_s24 = int_to_ptr.vmem [resolvable:$true] %s79_s24 }
  0x38   :  { %vm56_vm1 = vcmp.ge.u32.totalorder %v54_v2, 1288490189  ;;  %v58_v4 = vld [vmem:[#allocation5 + $0x8] sm:$0xff]  ;;  %v65_v5 = vld [vmem:[#allocation7] sm:$0xff]  ;;  %v66_v6 = vld [vmem:[#allocation7 + $0x8] sm:$0xff]  ;;  %s89_s26 = sshll.u32 %s230_s25, 4  ;;  %p179_p11 = scmp.lt.s32.totalorder %s80_s24, %s80_s24  ;;  %s295_s26 = int_to_ptr.vmem [resolvable:$true] %s89_s26 }
  0x39   :  { %v61_v7 = vsel %vm55_vm0, %v59_v3, 0.0  ;;  %v60_v8 = vmul.f32 1.4285715, %v58_v4  ;;  %v67_v9 = vmul.f32 1.4285715, %v65_v5  ;;  %s174_s2 = scalar_lea.vmem %s80_s24, 256 }
  0x3a   :  { %63 = vst [vmem:[#allocation8] sm:$0xff] %v61_v7  ;;  %v68_v10 = vmul.f32 1.4285715, %v66_v6  ;;  %p175_p10 = scmp.ne.s32.totalorder %s80_s24, %s174_s2  ;;  %p180_p12 = scmp.lt.s32.totalorder %s174_s2, %s174_s2 }
  0x3b   :  { %v62_v11 = vsel %vm56_vm1, %v60_v8, 0.0  ;;  %v69_v12 = vsel %vm55_vm0, %v67_v9, 0.0 }
  0x3c   :  { %64 = vst [vmem:[#allocation8 + $0x8] sm:$0xff] %v62_v11  ;;  %71 = vst [vmem:[#allocation9] sm:$0xff] %v69_v12  ;;  %v70_v13 = vsel %vm56_vm1, %v68_v10, 0.0  ;;  %p181_p13 = por %p180_p12, %p179_p11 }
  0x3d   :  { %72 = vst [vmem:[#allocation9 + $0x8] sm:$0xff] %v70_v13 }
  0x3e   :  { %p182_p0 = pnand %p181_p13, %p175_p10 }
  0x40   :  { %185 = shalt.err (!%p182_p0)
}
  0x41   :  { %s186_s29 = scalar_lea.hbm %s330_s3, 256 }
  0x42   :  { %p187_p1 = scmp.ne.s32.totalorder %s330_s3, %s186_s29  ;;  %p190_p2 = scmp.lt.u32.totalorder %s186_s29, %s330_s3 }
  0x44   :  { %p192_p3 = pnand %p190_p2, %p187_p1 }
  0x46   :  { %195 = shalt.err (!%p192_p3)
}
  0x47   :  { %82 = dma.vmem_to_hbm [thread:$0]  %s80_s24, 256, %s330_s3, [#allocation4]  }
  0x48   :  { %s196_s10 = scalar_lea.vmem %s295_s26, 256  ;;  %p201_p5 = scmp.lt.s32.totalorder %s295_s26, %s295_s26 }
  0x49   :  { %p197_p4 = scmp.ne.s32.totalorder %s295_s26, %s196_s10  ;;  %p202_p6 = scmp.lt.s32.totalorder %s196_s10, %s196_s10 }
  0x4b   :  { %p203_p7 = por %p202_p6, %p201_p5 }
  0x4d   :  { %p204_p8 = pnand %p203_p7, %p197_p4 }
  0x4f   :  { %207 = shalt.err (!%p204_p8)
}
  0x50   :  { %s208_s12 = scalar_lea.hbm %s331_s4, 256 }
  0x51   :  { %p209_p9 = scmp.ne.s32.totalorder %s331_s4, %s208_s12  ;;  %p212_p10 = scmp.lt.u32.totalorder %s208_s12, %s331_s4 }
  0x53   :  { %p214_p11 = pnand %p212_p10, %p209_p9 }
  0x55   :  { %217 = shalt.err (!%p214_p11)
}
  0x56   :  { %92 = dma.vmem_to_hbm [thread:$0]  %s295_s26, 256, %s331_s4, [#allocation10]  }
  0x57   :  { %222 = dma.done.wait [#allocation4], 256  }
  0x58   :  { %223 = vsyncadd [#allocation4], 4294967040 }
  0x59   :  { %224 = dma.done.wait [#allocation10], 256  }
  0x5a   :  { %225 = vsyncadd [#allocation10], 4294967040 }
  0x5b   :  { %99 = vsyncpa [#allocation3], 1 }
  0x5c   :  { %100 = vsyncpa [#allocation6], 1 }
  0x5d   :  { %101 = vsyncpa [#allocation4], 1 }
  0x5e   :  { %102 = vsyncpa [#allocation10], 1 }

</bundles_post_ra>
